<compile_context>
chip_gen: v5e
topology: v5e:2x2
jax: 0.10.0
libtpu: 0.0.40
codegen_flags: <defaults>
</compile_context>

<pallas_src>
import functools
import math

import jax
import jax.numpy as jnp
from jax.experimental import pallas as pl
from jax.experimental.pallas import tpu as pltpu

_VMEM_LIMIT = 48 * 1024 * 1024  # above v5e/v6e scoped defaults, under v7x physical


def _pick_tile(dim, target):
    """Largest divisor of `dim` that is <= target (trace-time Python ints)."""
    t = min(dim, target)
    while dim % t:
        t -= 1
    return t


# ----------------------------------------------------------------------------
# Tiled linear projection kernel: y = x @ W^T   (W stored PyTorch-style (N, K))
# ----------------------------------------------------------------------------
def _matmul_kernel(x_ref, w_ref, o_ref, acc_ref):
    @pl.when(pl.program_id(2) == 0)
    def _init():
        acc_ref[...] = jnp.zeros_like(acc_ref)

    # Contract last dim of x (K) against last dim of w (K): no transpose needed.
    acc_ref[...] += jax.lax.dot_general(
        x_ref[...], w_ref[...],
        dimension_numbers=(((1,), (1,)), ((), ())),
        preferred_element_type=jnp.float32,
    )

    @pl.when(pl.program_id(2) == pl.num_programs(2) - 1)
    def _store():
        o_ref[...] = acc_ref[...].astype(o_ref.dtype)


def linear(x2d, w, *, tm=256, tn=256, tk=512):
    """x2d: (M, K), w: (N, K) -> (M, N) = x2d @ w^T, tiled & pipelined."""
    M, K = x2d.shape
    N, K2 = w.shape
    assert K == K2
    tm = _pick_tile(M, tm)
    tn = _pick_tile(N, tn)
    tk = _pick_tile(K, tk)
    return pl.pallas_call(
        _matmul_kernel,
        out_shape=jax.ShapeDtypeStruct((M, N), x2d.dtype),
        grid_spec=pltpu.PrefetchScalarGridSpec(
            num_scalar_prefetch=0,
            grid=(M // tm, N // tn, K // tk),
            in_specs=[
                pl.BlockSpec((tm, tk), lambda i, j, k: (i, k)),
                pl.BlockSpec((tn, tk), lambda i, j, k: (j, k)),
            ],
            out_specs=pl.BlockSpec((tm, tn), lambda i, j, k: (i, j)),
            scratch_shapes=[pltpu.VMEM((tm, tn), jnp.float32)],
        ),
        compiler_params=pltpu.CompilerParams(
            dimension_semantics=("parallel", "parallel", "arbitrary"),
            vmem_limit_bytes=_VMEM_LIMIT,
        ),
    )(x2d, w)


# ----------------------------------------------------------------------------
# Flash-attention kernel with causal masking and in-spec GQA head mapping.
#   q: (B, Hq, S, D), k/v: (B, Hkv, S, D) -> out (B, Hq, S, D)
# ----------------------------------------------------------------------------
def _flash_attn_kernel(q_ref, k_ref, v_ref, o_ref, m_sc, l_sc, acc_sc,
                       *, scale, tq, tk):
    qi = pl.program_id(2)
    ki = pl.program_id(3)

    @pl.when(ki == 0)
    def _init():
        m_sc[...] = jnp.full_like(m_sc, -1e30)
        l_sc[...] = jnp.zeros_like(l_sc)
        acc_sc[...] = jnp.zeros_like(acc_sc)

    q_start = qi * tq
    kv_start = ki * tk

    # Skip KV blocks that lie entirely above the causal diagonal.
    @pl.when(kv_start <= q_start + (tq - 1))
    def _compute():
        q = q_ref[0, 0]   # (tq, D)
        k = k_ref[0, 0]   # (tk, D)
        v = v_ref[0, 0]   # (tk, D)

        s = jax.lax.dot_general(
            q, k, dimension_numbers=(((1,), (1,)), ((), ())),
            preferred_element_type=jnp.float32) * scale          # (tq, tk)

        # Per-tile causal mask (tiny iotas, never S x S).  Use a large finite
        # negative instead of -inf so the online-softmax rescale never NaNs.
        row = q_start + jax.lax.broadcasted_iota(jnp.int32, (tq, tk), 0)
        col = kv_start + jax.lax.broadcasted_iota(jnp.int32, (tq, tk), 1)
        s = jnp.where(col <= row, s, -1e30)

        m_prev = m_sc[...]
        m_new = jnp.maximum(m_prev, s.max(axis=-1, keepdims=True))
        alpha = jnp.exp(m_prev - m_new)
        p = jnp.exp(s - m_new)
        l_sc[...] = alpha * l_sc[...] + p.sum(axis=-1, keepdims=True)
        acc_sc[...] = alpha * acc_sc[...] + jnp.dot(
            p.astype(v.dtype), v, preferred_element_type=jnp.float32)
        m_sc[...] = m_new

    @pl.when(ki == pl.num_programs(3) - 1)
    def _finalize():
        # approx=False for bit-faithful normalization; flip to approx=True to
        # move the divide onto the (idle) EUP slot at large scale.
        inv_l = pl.reciprocal(l_sc[...], approx=False)
        o_ref[0, 0] = (acc_sc[...] * inv_l).astype(o_ref.dtype)


def flash_attention(q, k, v, n_rep, *, block_q=128, block_k=128):
    """Causal GQA attention.  q: (B, Hq, S, D); k, v: (B, Hkv, S, D)."""
    B, Hq, S, D = q.shape
    tq = _pick_tile(S, block_q)
    tk = _pick_tile(S, block_k)
    scale = 1.0 / math.sqrt(D)

    q_spec = pl.BlockSpec((1, 1, tq, D), lambda b, h, qi, ki: (b, h, qi, 0))
    # GQA: map query head h to its shared KV head (no repeat_kv materialization).
    kv_spec = pl.BlockSpec((1, 1, tk, D), lambda b, h, qi, ki: (b, h // n_rep, ki, 0))
    o_spec = pl.BlockSpec((1, 1, tq, D), lambda b, h, qi, ki: (b, h, qi, 0))

    kernel = functools.partial(_flash_attn_kernel, scale=scale, tq=tq, tk=tk)
    return pl.pallas_call(
        kernel,
        out_shape=jax.ShapeDtypeStruct((B, Hq, S, D), q.dtype),
        grid_spec=pltpu.PrefetchScalarGridSpec(
            num_scalar_prefetch=0,
            grid=(B, Hq, S // tq, S // tk),
            in_specs=[q_spec, kv_spec, kv_spec],
            out_specs=o_spec,
            scratch_shapes=[
                pltpu.VMEM((tq, 1), jnp.float32),   # running max m
                pltpu.VMEM((tq, 1), jnp.float32),   # running denom l
                pltpu.VMEM((tq, D), jnp.float32),   # output accumulator
            ],
        ),
        compiler_params=pltpu.CompilerParams(
            dimension_semantics=("parallel", "parallel", "parallel", "arbitrary"),
            vmem_limit_bytes=_VMEM_LIMIT,
        ),
    )(q, k, v)


# ----------------------------------------------------------------------------
# Rotary embedding (matches torch apply_rotary_emb: interleaved real/imag pairs)
# ----------------------------------------------------------------------------
def apply_rotary_emb(xq, xk, freqs_cos, freqs_sin):
    # xq: (B, S, Hq, D), xk: (B, S, Hkv, D); freqs_*: (S, D//2)
    # TODO(synk): fuse RoPE into the fused-QKV kernel epilogue to avoid one
    #             extra HBM round-trip of Q/K.
    c = freqs_cos[None, :, None, :]
    s = freqs_sin[None, :, None, :]

    def rot(x):
        xr = x.reshape(x.shape[:-1] + (x.shape[-1] // 2, 2))
        x_r = xr[..., 0]
        x_i = xr[..., 1]
        o_r = x_r * c - x_i * s
        o_i = x_r * s + x_i * c
        return jnp.stack([o_r, o_i], axis=-1).reshape(x.shape)

    return rot(xq), rot(xk)


# ----------------------------------------------------------------------------
# Full Attention.forward (dropout=0.0, inference)
# ----------------------------------------------------------------------------
def attention_forward(x, freqs_cos, freqs_sin, params, n_heads, n_kv_heads):
    B, S, dim = x.shape
    head_dim = dim // n_heads
    n_rep = n_heads // n_kv_heads
    nq = n_heads * head_dim
    nkv = n_kv_heads * head_dim

    # Fused QKV projection: read the activations once, one wide lane-dense GEMM.
    wqkv = jnp.concatenate([params["wq"], params["wk"], params["wv"]], axis=0)
    x2d = x.reshape(B * S, dim)
    qkv = linear(x2d, wqkv)                                   # (B*S, nq + 2*nkv)

    xq = qkv[:, :nq].reshape(B, S, n_heads, head_dim)
    xk = qkv[:, nq:nq + nkv].reshape(B, S, n_kv_heads, head_dim)
    xv = qkv[:, nq + nkv:].reshape(B, S, n_kv_heads, head_dim)

    xq, xk = apply_rotary_emb(xq, xk, freqs_cos, freqs_sin)

    # (B, S, H, D) -> (B, H, S, D).  GQA is handled inside the flash kernel via
    # the K/V BlockSpec index_map, so K/V stay at n_kv_heads (no repeat_kv).
    xq = jnp.transpose(xq, (0, 2, 1, 3))
    xk = jnp.transpose(xk, (0, 2, 1, 3))
    xv = jnp.transpose(xv, (0, 2, 1, 3))

    out = flash_attention(xq, xk, xv, n_rep)                  # (B, Hq, S, D)
    out = jnp.transpose(out, (0, 2, 1, 3)).reshape(B * S, n_heads * head_dim)
    out = linear(out, params["wo"]).reshape(B, S, dim)
    # TODO(synk): attn_dropout / resid_dropout are identity at dropout=0.0 (eval).
    return out


# ----------------------------------------------------------------------------
# Pure-JAX reference (for a sanity check)
# ----------------------------------------------------------------------------
def attention_reference(x, freqs_cos, freqs_sin, params, n_heads, n_kv_heads):
    B, S, dim = x.shape
    head_dim = dim // n_heads
    n_rep = n_heads // n_kv_heads

    xq = (x @ params["wq"].T).reshape(B, S, n_heads, head_dim)
    xk = (x @ params["wk"].T).reshape(B, S, n_kv_heads, head_dim)
    xv = (x @ params["wv"].T).reshape(B, S, n_kv_heads, head_dim)
    xq, xk = apply_rotary_emb(xq, xk, freqs_cos, freqs_sin)
    xk = jnp.repeat(xk, n_rep, axis=2)
    xv = jnp.repeat(xv, n_rep, axis=2)
    xq = jnp.transpose(xq, (0, 2, 1, 3))
    xk = jnp.transpose(xk, (0, 2, 1, 3))
    xv = jnp.transpose(xv, (0, 2, 1, 3))
    scores = jnp.einsum("bhqd,bhkd->bhqk", xq, xk) / math.sqrt(head_dim)
    mask = jnp.tril(jnp.ones((S, S), dtype=bool))
    scores = jnp.where(mask[None, None], scores, -jnp.inf)
    probs = jax.nn.softmax(scores, axis=-1)
    out = jnp.einsum("bhqk,bhkd->bhqd", probs, xv)
    out = jnp.transpose(out, (0, 2, 1, 3)).reshape(B, S, dim)
    return out @ params["wo"].T


if __name__ == "__main__":
    # Small config consistent with the module: dim=32, n_heads=4, n_kv_heads=2
    # (n_rep=2 exercises the in-spec GQA mapping), head_dim=8, batch=2, seqlen=8.
    B, S, dim = 2, 8, 32
    n_heads, n_kv_heads = 4, 2
    head_dim = dim // n_heads

    key = jax.random.PRNGKey(0)
    kx, kq, kk, kv, ko = jax.random.split(key, 5)

    x = jax.random.normal(kx, (B, S, dim), dtype=jnp.float32)
    scale = 1.0 / math.sqrt(dim)
    params = {
        "wq": jax.random.normal(kq, (n_heads * head_dim, dim), jnp.float32) * scale,
        "wk": jax.random.normal(kk, (n_kv_heads * head_dim, dim), jnp.float32) * scale,
        "wv": jax.random.normal(kv, (n_kv_heads * head_dim, dim), jnp.float32) * scale,
        "wo": jax.random.normal(ko, (dim, n_heads * head_dim), jnp.float32) * scale,
    }

    # Precomputed rotary frequencies: (S, head_dim // 2)
    inv_freq = 1.0 / (10000.0 ** (jnp.arange(0, head_dim, 2, dtype=jnp.float32) / head_dim))
    t = jnp.arange(S, dtype=jnp.float32)
    freqs = jnp.outer(t, inv_freq)
    freqs_cos = jnp.cos(freqs)
    freqs_sin = jnp.sin(freqs)

    out = attention_forward(x, freqs_cos, freqs_sin, params, n_heads, n_kv_heads)
    out = jax.block_until_ready(out)

    ref = attention_reference(x, freqs_cos, freqs_sin, params, n_heads, n_kv_heads)
    assert out.shape == (B, S, dim)
    assert jnp.allclose(out, ref, atol=1e-4, rtol=1e-4), "mismatch vs reference"

    print("KERNEL_OK")
</pallas_src>

<mosaic_0001>
module attributes {stable_mosaic.version = 11 : i64} {
  func.func @_matmul_kernel(%arg0: i32, %arg1: i32, %arg2: i32, %arg3: memref<16x32xf32, #tpu.memory_space<vmem>>, %arg4: memref<64x32xf32, #tpu.memory_space<vmem>>, %arg5: memref<16x64xf32, #tpu.memory_space<vmem>>, %arg6: memref<16x64xf32, #tpu.memory_space<vmem>>) attributes {dimension_semantics = [#tpu.dimension_semantics<parallel>, #tpu.dimension_semantics<parallel>, #tpu.dimension_semantics<arbitrary>], iteration_bounds = array<i64: 1, 1, 1>, scalar_prefetch = 0 : i64, scratch_operands = 1 : i64, tpu.core_type = #tpu.core_type<tc>, window_params = [{transform_indices = @transform_0, window_bounds = array<i64: 16, 32>}, {transform_indices = @transform_1, window_bounds = array<i64: 64, 32>}, {transform_indices = @transform_2, window_bounds = array<i64: 16, 64>}]} {
    %c0_i32 = arith.constant 0 : i32
    %0 = arith.cmpi eq, %arg2, %c0_i32 : i32
    %1 = arith.extui %0 : i1 to i32
    %c0_i32_0 = arith.constant 0 : i32
    %2 = arith.cmpi ne, %1, %c0_i32_0 : i32
    scf.if %2 {
      %cst_10 = arith.constant 0.000000e+00 : f32
      %12 = vector.broadcast %cst_10 : f32 to vector<16x64xf32>
      %c0_11 = arith.constant 0 : index
      %c0_12 = arith.constant 0 : index
      %13 = vector.load %arg6[%c0_11, %c0_12] : memref<16x64xf32, #tpu.memory_space<vmem>>, vector<16x64xf32>
      tpu.vector_store %arg6[%c0_11, %c0_12], %12 {strides = array<i32>} : memref<16x64xf32, #tpu.memory_space<vmem>>, vector<16x64xf32>,
    } else {
    }
    %c0 = arith.constant 0 : index
    %c0_1 = arith.constant 0 : index
    %3 = vector.load %arg6[%c0, %c0_1] : memref<16x64xf32, #tpu.memory_space<vmem>>, vector<16x64xf32>
    %c0_2 = arith.constant 0 : index
    %c0_3 = arith.constant 0 : index
    %4 = vector.load %arg3[%c0_2, %c0_3] : memref<16x32xf32, #tpu.memory_space<vmem>>, vector<16x32xf32>
    %c0_4 = arith.constant 0 : index
    %c0_5 = arith.constant 0 : index
    %5 = vector.load %arg4[%c0_4, %c0_5] : memref<64x32xf32, #tpu.memory_space<vmem>>, vector<64x32xf32>
    %cst = arith.constant dense<0.000000e+00> : vector<16x64xf32>
    %6 = tpu.matmul %4, %5, %cst {dimension_numbers = #tpu.dot_dimension_numbers<[1], [1], [0], [0], [0, 0, 1, 0], [], []>} : vector<16x32xf32>, vector<64x32xf32>, vector<16x64xf32> -> vector<16x64xf32>
    %7 = arith.addf %3, %6 : vector<16x64xf32>
    %c0_6 = arith.constant 0 : index
    %c0_7 = arith.constant 0 : index
    %8 = vector.load %arg6[%c0_6, %c0_7] : memref<16x64xf32, #tpu.memory_space<vmem>>, vector<16x64xf32>
    tpu.vector_store %arg6[%c0_6, %c0_7], %7 {strides = array<i32>} : memref<16x64xf32, #tpu.memory_space<vmem>>, vector<16x64xf32>,
    %c0_i32_8 = arith.constant 0 : i32
    %9 = arith.cmpi eq, %arg2, %c0_i32_8 : i32
    %10 = arith.extui %9 : i1 to i32
    %c0_i32_9 = arith.constant 0 : i32
    %11 = arith.cmpi ne, %10, %c0_i32_9 : i32
    scf.if %11 {
      %c0_10 = arith.constant 0 : index
      %c0_11 = arith.constant 0 : index
      %12 = vector.load %arg6[%c0_10, %c0_11] : memref<16x64xf32, #tpu.memory_space<vmem>>, vector<16x64xf32>
      %c0_12 = arith.constant 0 : index
      %c0_13 = arith.constant 0 : index
      %13 = vector.load %arg5[%c0_12, %c0_13] : memref<16x64xf32, #tpu.memory_space<vmem>>, vector<16x64xf32>
      tpu.vector_store %arg5[%c0_12, %c0_13], %12 {strides = array<i32>} : memref<16x64xf32, #tpu.memory_space<vmem>>, vector<16x64xf32>,
    } else {
    }
    return
  }
  func.func @transform_0(%arg0: i32, %arg1: i32, %arg2: i32) -> (i32, i32) {
    %c0_i32 = arith.constant 0 : i32
    return %arg0, %arg2 : i32, i32
  }
  func.func @transform_1(%arg0: i32, %arg1: i32, %arg2: i32) -> (i32, i32) {
    %c0_i32 = arith.constant 0 : i32
    return %arg1, %arg2 : i32, i32
  }
  func.func @transform_2(%arg0: i32, %arg1: i32, %arg2: i32) -> (i32, i32) {
    %c0_i32 = arith.constant 0 : i32
    return %arg0, %arg1 : i32, i32
  }
}

</mosaic_0001>

<bundles_post_ra>
// kernel: tpu_custom_call.1
= control target key start
LH: loop header
LB: loop body
LE: loop exit
PB: predicated region body
PF: predicated region fallthrough
CT: control target
= control target key end

     0   :  { %vm31_vm0 = vcmask 261120   ;;  %vm16_vm1 = vcmask 523264   ;;  %v163_v1 = vmov 0.0   ;;  %s239_s0 = inlined_call_operand.vmem [shape: f32[16,32], index: 0, kind: input, shape index: {}]   ;;  %s240_s1 = inlined_call_operand.vmem [shape: f32[64,32], index: 1, kind: input, shape index: {}]   ;;  %s241_s2 = inlined_call_operand.hbm [shape: f32[16,64], index: 2, kind: output, shape index: {}]  }
   0x1   :  { %v30_v0 = vld [vmem:[%s240_s1 + $0x38] sm:$0xff]  ;;  %17 = vst.msk [vmem:[#allocation2] sm:$0xff] %vm16_vm1, %v163_v1  ;;  %v29_v2 = vld [vmem:[%s240_s1 + $0x30] sm:$0xff] }
   0x2   :  { %115 = vmatpush.xpose.msk.msra.mxu0 %vm31_vm0, %v30_v0  ;;  %125 = vmatpush.xpose.msk.msra.mxu1 %vm31_vm0, %v30_v0  ;;  %18 = vst.msk [vmem:[#allocation2 + $0x8] sm:$0xff] %vm16_vm1, %v163_v1 }
   0x3   :  { %7 = vsyncpa [#allocation4], 0  ;;  %v28_v3 = vld [vmem:[%s240_s1 + $0x28] sm:$0xff]  ;;  %v27_v4 = vld [vmem:[%s240_s1 + $0x20] sm:$0xff]  ;;  %s165_s4 = smov 128   ;;  %s166_s5 = smov 8  }
   0x4   :  { %v26_v5 = vld [vmem:[%s240_s1 + $0x18] sm:$0xff]  ;;  %v25_v6 = vld [vmem:[%s240_s1 + $0x10] sm:$0xff]  ;;  %v24_v7 = vld [vmem:[%s240_s1 + $0x8] sm:$0xff] }
   0x5   :  { %v23_v8 = vld [vmem:[%s240_s1] sm:$0xff]  ;;  %v22_v10 = vld [vmem:[%s239_s0 + $0x8] sm:$0xff]  ;;  %s164_s1 = smov [#allocation3]  }
   0x6   :  { %116 = vmatpush.xpose.msk.msra.mxu0 %vm31_vm0, %v29_v2  ;;  %126 = vmatpush.xpose.msk.msra.mxu1 %vm31_vm0, %v29_v2  ;;  %v21_v9 = vld [vmem:[%s239_s0] sm:$0xff]  ;;  %s101_s29 = sshll.u32 %s164_s1, 4  ;;  %s103_s0 = sshll.u32 %s241_s2, 4  ;;  %s102_s29 = int_to_ptr.vmem [resolvable:$true] %s101_s29  ;;  %s104_s0 = int_to_ptr.hbm [resolvable:$true] %s103_s0 }
   0x8   :  { %v19_v11 = vld [vmem:[#allocation2] sm:$0xff] }
   0x9   :  { %v20_v12 = vld [vmem:[#allocation2 + $0x8] sm:$0xff] }
   0xa   :  { %117 = vmatpush.xpose.msk.msra.mxu0 %vm31_vm0, %v28_v3  ;;  %127 = vmatpush.xpose.msk.msra.mxu1 %vm31_vm0, %v28_v3 }
   0xe   :  { %118 = vmatpush.xpose.msk.msra.mxu0 %vm31_vm0, %v27_v4  ;;  %128 = vmatpush.xpose.msk.msra.mxu1 %vm31_vm0, %v27_v4 }
  0x12   :  { %119 = vmatpush.xpose.msk.msra.mxu0 %vm31_vm0, %v26_v5  ;;  %129 = vmatpush.xpose.msk.msra.mxu1 %vm31_vm0, %v26_v5 }
  0x16   :  { %120 = vmatpush.xpose.msk.msra.mxu0 %vm31_vm0, %v25_v6  ;;  %130 = vmatpush.xpose.msk.msra.mxu1 %vm31_vm0, %v25_v6 }
  0x1a   :  { %121 = vmatpush.xpose.msk.msra.mxu0 %vm31_vm0, %v24_v7  ;;  %131 = vmatpush.xpose.msk.msra.mxu1 %vm31_vm0, %v24_v7 }
  0x1e   :  { %122 = vmatpush.xpose.msk.msra.mxu0 %vm31_vm0, %v23_v8  ;;  %132 = vmatpush.xpose.msk.msra.mxu1 %vm31_vm0, %v23_v8 }
  0x21   :  { %123 = vmatmul.msk.f32.vlgmr.msra.gmra.mxu0 %vm31_vm0, %v21_v9  ;;  %124 = vmatmul.msk.f32.vlgmr.msra.gmra.mxu1 %vm31_vm0, %v22_v10 }
  0x9e   :  { %v79_v13 = vpop.f32.mrf.mxu0  ;;  %v82_v14 = vpop.f32.mrf.mxu1 }
  0x9f   :  { %v85_v15 = vadd.f32 %v79_v13, %v19_v11  ;;  %v86_v16 = vadd.f32 %v82_v14, %v20_v12 }
  0xa1   :  { %88 = vst.msk [vmem:[#allocation2] sm:$0xff] %vm16_vm1, %v85_v15 }
  0xa2   :  { %89 = vst.msk [vmem:[#allocation2 + $0x8] sm:$0xff] %vm16_vm1, %v86_v16 }
  0xa8   :  { %v93_v17 = vld [vmem:[#allocation2] sm:$0xff] }
  0xa9   :  { %v94_v18 = vld [vmem:[#allocation2 + $0x8] sm:$0xff]  ;;  %95 = vst.msk [vmem:[#allocation3] sm:$0xff] %vm16_vm1, %v93_v17 }
  0xaa   :  { %96 = vst.msk [vmem:[#allocation3 + $0x8] sm:$0xff] %vm16_vm1, %v94_v18 }
  0xab   :  { %109 = dma.vmem_to_hbm [thread:$0]  %s102_s29, 256, %s104_s0, [#allocation4], %s165_s4, %s165_s4, %s166_s5  }
  0xac   :  { %161 = dma.done.wait [#allocation4], 256  }
  0xad   :  { %162 = vsyncadd [#allocation4], 4294967040 }
  0xae   :  { %114 = vsyncpa [#allocation4], 1 }

</bundles_post_ra>
